<compile_context>
chip_gen: v6e
topology: v6e:2x2x1
jax: 0.10.0
libtpu: 0.0.40
codegen_flags: <defaults>
</compile_context>

<pallas_src>
import jax
import jax.numpy as jnp
from jax.experimental import pallas as pl
from jax.experimental.pallas import tpu as pltpu

GAMMA = 0.1
SIZE_PSC = 128  # FCALayer default -> interpolation target is always (128, 128)


# ---------------------------------------------------------------------------
# fftshift + bilinear-resize-to-(size_psc)^2 + global-avg-pool, folded into a
# single fixed (H, W) weight map (all three ops are linear in their input).
# ---------------------------------------------------------------------------
def _bilinear_avg_weights(in_size, out_size):
    # Per-input-index weight of (mean over the bilinearly resized axis),
    # matching torch.nn.functional.interpolate(mode='bilinear',
    # align_corners=False, antialias=False).
    scale = in_size / out_size
    o = jnp.arange(out_size, dtype=jnp.float32)
    src = jnp.maximum((o + 0.5) * scale - 0.5, 0.0)
    i0 = jnp.minimum(jnp.floor(src).astype(jnp.int32), in_size - 1)
    i1 = jnp.minimum(i0 + 1, in_size - 1)
    frac = src - i0.astype(jnp.float32)
    rows = jnp.arange(out_size, dtype=jnp.int32)
    A = jnp.zeros((out_size, in_size), jnp.float32)
    A = A.at[rows, i0].add(1.0 - frac)
    A = A.at[rows, i1].add(frac)
    return jnp.mean(A, axis=0)                    # (in_size,)


def _pool_weight_map(H, W, size_psc=SIZE_PSC):
    r = _bilinear_avg_weights(H, size_psc)
    c = _bilinear_avg_weights(W, size_psc)
    # fftshift2d rolls rows/cols left by floor(dim/2); folding that onto the
    # weights is a roll by +floor(dim/2) (correct for odd sizes as well).
    r = jnp.roll(r, H // 2)
    c = jnp.roll(c, W // 2)
    return r[:, None] * c[None, :]                # (H, W)


def _pooled_spectrum(x32, rw, gamma=GAMMA):
    # TODO(synk): complex 2-D FFT has no Pallas primitive; it and the fused
    # abs/pow/weighted-pool epilogue run in plain JAX (XLA fuses the epilogue,
    # so only the (N, C) pooled vector feeds the Pallas kernel).
    fftmag = jnp.abs(jnp.fft.fft2(x32, axes=(-2, -1)))        # (N, C, H, W)
    a = (fftmag + 1e-8) ** gamma
    return jnp.sum(a * rw[None, None, :, :], axis=(-2, -1))   # (N, C)


# ---------------------------------------------------------------------------
# Pallas kernel: channel-attention MLP (the two 1x1 convs) + broadcast multiply
# ---------------------------------------------------------------------------
def _fca_apply_kernel(pooled_ref, wcd_ref, bcd_ref, wcu_ref, bcu_ref,
                      x_ref, o_ref):
    # pooled_ref: (1, C, 1)   wcd: (4, C)  bcd: (4, 1)  wcu: (C, 4)  bcu: (C, 1)
    # x_ref / o_ref: (1, C, hw_tile)  -- trailing dim lane-dense
    p = pooled_ref[0]                                         # (C, 1) column
    h = jnp.dot(wcd_ref[...], p, preferred_element_type=jnp.float32) + bcd_ref[...]
    h = jnp.maximum(h, 0.0)                                   # ReLU
    y = jnp.dot(wcu_ref[...], h, preferred_element_type=jnp.float32) + bcu_ref[...]
    y = jax.nn.sigmoid(y)                                     # (C, 1)
    out = x_ref[...].astype(jnp.float32) * y[None, :, :]      # lane-broadcast over hw
    o_ref[...] = out.astype(o_ref.dtype)


def _choose_hw_tile(hw, c, elem_bytes=4, target_block_bytes=2 * 1024 * 1024):
    # Largest spatial tile (divisor of hw, multiple of 128) whose (C, tile)
    # block fits the per-block budget; small images use the full hw. Keeps the
    # same code within v7x's 64 MiB VMEM while staying lane-dense.
    if hw * c * elem_bytes <= target_block_bytes:
        return hw
    best = 0
    t = 128
    while t <= hw and t * c * elem_bytes <= target_block_bytes:
        if hw % t == 0:
            best = t
        t += 128
    return best if best else hw


def fca_layer_forward(x_nchw, params, *, size_psc=SIZE_PSC, gamma=GAMMA):
    N, C, H, W = x_nchw.shape
    x32 = x_nchw.astype(jnp.float32)

    # --- JAX glue: FFT magnitude ^ gamma, weighted (shift+resize+pool) ------
    rw = _pool_weight_map(H, W, size_psc)
    pooled = _pooled_spectrum(x32, rw, gamma)                 # (N, C)
    pooled3 = pooled[:, :, None]                              # (N, C, 1)

    # --- Pallas: attention MLP + x * y, lane-dense (N, C, H*W) layout -------
    hw = H * W
    hw_tile = _choose_hw_tile(hw, C)
    n_hw = hw // hw_tile
    x_flat = x32.reshape(N, C, hw)

    cd_out = params["cd_w"].shape[0]                          # 4
    wcd = params["cd_w"].astype(jnp.float32)                  # (4, C)
    bcd = params["cd_b"].astype(jnp.float32).reshape(cd_out, 1)
    wcu = params["cu_w"].astype(jnp.float32)                  # (C, 4)
    bcu = params["cu_b"].astype(jnp.float32).reshape(C, 1)

    out_flat = pl.pallas_call(
        _fca_apply_kernel,
        out_shape=jax.ShapeDtypeStruct((N, C, hw), x_nchw.dtype),
        grid=(N, n_hw),
        in_specs=[
            pl.BlockSpec((1, C, 1), lambda n, t: (n, 0, 0)),        # pooled
            pl.BlockSpec((cd_out, C), lambda n, t: (0, 0)),         # cd weight
            pl.BlockSpec((cd_out, 1), lambda n, t: (0, 0)),         # cd bias
            pl.BlockSpec((C, cd_out), lambda n, t: (0, 0)),         # cu weight
            pl.BlockSpec((C, 1), lambda n, t: (0, 0)),              # cu bias
            pl.BlockSpec((1, C, hw_tile), lambda n, t: (n, 0, t)),  # x
        ],
        out_specs=pl.BlockSpec((1, C, hw_tile), lambda n, t: (n, 0, t)),
        compiler_params=pltpu.CompilerParams(
            dimension_semantics=("parallel", "parallel"),
            vmem_limit_bytes=32 * 1024 * 1024),
    )(pooled3, wcd, bcd, wcu, bcu, x_flat)

    return out_flat.reshape(N, C, H, W)


# ---------------------------------------------------------------------------
# Params (torch layout: 1x1 conv weights squeezed to dense (out, in) matrices)
# ---------------------------------------------------------------------------
def init_params(key, channel=64):
    ks = jax.random.split(key, 4)
    f32 = jnp.float32
    # FCALayer hardcodes Conv2d(64, 4, 1) / Conv2d(4, 64, 1).
    return {
        "cd_w": 0.1 * jax.random.normal(ks[0], (4, channel), f32),
        "cd_b": 0.01 * jax.random.normal(ks[1], (4,), f32),
        "cu_w": 0.1 * jax.random.normal(ks[2], (channel, 4), f32),
        "cu_b": 0.01 * jax.random.normal(ks[3], (channel,), f32),
    }


def _jax_reference(x_nchw, params, *, size_psc=SIZE_PSC, gamma=GAMMA):
    # Plain-JAX reference of the full forward (validates the Pallas kernel).
    x32 = x_nchw.astype(jnp.float32)
    H, W = x32.shape[-2:]
    rw = _pool_weight_map(H, W, size_psc)
    pooled = _pooled_spectrum(x32, rw, gamma)                 # (N, C)
    hidden = jnp.maximum(
        jnp.dot(pooled, params["cd_w"].T, precision=jax.lax.Precision.HIGHEST)
        + params["cd_b"][None, :], 0.0)
    y = jax.nn.sigmoid(
        jnp.dot(hidden, params["cu_w"].T, precision=jax.lax.Precision.HIGHEST)
        + params["cu_b"][None, :])
    return x32 * y[:, :, None, None]


if __name__ == "__main__":
    key = jax.random.PRNGKey(0)
    k_x, k_p = jax.random.split(key)

    # channel must be 64: FCALayer's 1x1 convs are hardcoded to 64 -> 4 -> 64.
    N, C, H, W = 2, 64, 16, 16
    x = jax.random.normal(k_x, (N, C, H, W), jnp.float32)
    params = init_params(k_p, C)

    out = fca_layer_forward(x, params)
    jax.block_until_ready(out)
    assert out.shape == (N, C, H, W), out.shape

    ref = _jax_reference(x, params)
    assert jnp.allclose(out, ref, atol=1e-4, rtol=1e-4), \
        float(jnp.max(jnp.abs(out - ref)))
    print("KERNEL_OK")
</pallas_src>

<mosaic_0001>
module attributes {stable_mosaic.version = 11 : i64} {
  func.func @_fca_apply_kernel(%arg0: i32, %arg1: i32, %arg2: memref<1x64x1xf32, #tpu.memory_space<vmem>>, %arg3: memref<4x64xf32, #tpu.memory_space<vmem>>, %arg4: memref<4x1xf32, #tpu.memory_space<vmem>>, %arg5: memref<64x4xf32, #tpu.memory_space<vmem>>, %arg6: memref<64x1xf32, #tpu.memory_space<vmem>>, %arg7: memref<1x64x256xf32, #tpu.memory_space<vmem>>, %arg8: memref<1x64x256xf32, #tpu.memory_space<vmem>>) attributes {dimension_semantics = [#tpu.dimension_semantics<parallel>, #tpu.dimension_semantics<parallel>], iteration_bounds = array<i64: 2, 1>, scalar_prefetch = 0 : i64, scratch_operands = 0 : i64, tpu.core_type = #tpu.core_type<tc>, window_params = [{transform_indices = @transform_0, window_bounds = array<i64: 1, 64, 1>}, {pipeline_mode = #tpu.pipeline_mode<synchronous>, transform_indices = @transform_1, window_bounds = array<i64: 4, 64>}, {pipeline_mode = #tpu.pipeline_mode<synchronous>, transform_indices = @transform_2, window_bounds = array<i64: 4, 1>}, {pipeline_mode = #tpu.pipeline_mode<synchronous>, transform_indices = @transform_3, window_bounds = array<i64: 64, 4>}, {pipeline_mode = #tpu.pipeline_mode<synchronous>, transform_indices = @transform_4, window_bounds = array<i64: 64, 1>}, {transform_indices = @transform_5, window_bounds = array<i64: 1, 64, 256>}, {transform_indices = @transform_6, window_bounds = array<i64: 1, 64, 256>}]} {
    %c0 = arith.constant 0 : index
    %c0_0 = arith.constant 0 : index
    %c0_1 = arith.constant 0 : index
    %0 = vector.load %arg2[%c0, %c0_0, %c0_1] : memref<1x64x1xf32, #tpu.memory_space<vmem>>, vector<1x64x1xf32>
    %1 = vector.shape_cast %0 : vector<1x64x1xf32> to vector<64x1xf32>
    %c0_2 = arith.constant 0 : index
    %c0_3 = arith.constant 0 : index
    %2 = vector.load %arg3[%c0_2, %c0_3] : memref<4x64xf32, #tpu.memory_space<vmem>>, vector<4x64xf32>
    %cst = arith.constant dense<0.000000e+00> : vector<4x1xf32>
    %3 = tpu.matmul %2, %1, %cst {dimension_numbers = #tpu.dot_dimension_numbers<[1], [0], [0], [1], [0, 0, 1, 1], [], []>} : vector<4x64xf32>, vector<64x1xf32>, vector<4x1xf32> -> vector<4x1xf32>
    %c0_4 = arith.constant 0 : index
    %c0_5 = arith.constant 0 : index
    %4 = vector.load %arg4[%c0_4, %c0_5] : memref<4x1xf32, #tpu.memory_space<vmem>>, vector<4x1xf32>
    %5 = arith.addf %3, %4 : vector<4x1xf32>
    %cst_6 = arith.constant 0.000000e+00 : f32
    %6 = vector.broadcast %cst_6 : f32 to vector<4x1xf32>
    %7 = arith.maximumf %5, %6 : vector<4x1xf32>
    %c0_7 = arith.constant 0 : index
    %c0_8 = arith.constant 0 : index
    %8 = vector.load %arg5[%c0_7, %c0_8] : memref<64x4xf32, #tpu.memory_space<vmem>>, vector<64x4xf32>
    %cst_9 = arith.constant dense<0.000000e+00> : vector<64x1xf32>
    %9 = tpu.matmul %8, %7, %cst_9 {dimension_numbers = #tpu.dot_dimension_numbers<[1], [0], [0], [1], [0, 0, 1, 1], [], []>} : vector<64x4xf32>, vector<4x1xf32>, vector<64x1xf32> -> vector<64x1xf32>
    %c0_10 = arith.constant 0 : index
    %c0_11 = arith.constant 0 : index
    %10 = vector.load %arg6[%c0_10, %c0_11] : memref<64x1xf32, #tpu.memory_space<vmem>>, vector<64x1xf32>
    %11 = arith.addf %9, %10 : vector<64x1xf32>
    %12 = arith.negf %11 : vector<64x1xf32>
    %13 = math.exp %12 : vector<64x1xf32>
    %cst_12 = arith.constant 1.000000e+00 : f32
    %14 = vector.broadcast %cst_12 : f32 to vector<64x1xf32>
    %15 = arith.addf %14, %13 : vector<64x1xf32>
    %16 = arith.divf %14, %15 : vector<64x1xf32>
    %c0_13 = arith.constant 0 : index
    %c0_14 = arith.constant 0 : index
    %c0_15 = arith.constant 0 : index
    %17 = vector.load %arg7[%c0_13, %c0_14, %c0_15] : memref<1x64x256xf32, #tpu.memory_space<vmem>>, vector<1x64x256xf32>
    %18 = vector.shape_cast %16 : vector<64x1xf32> to vector<1x64x1xf32>
    %19 = vector.broadcast %18 : vector<1x64x1xf32> to vector<1x64x256xf32>
    %20 = arith.mulf %17, %19 : vector<1x64x256xf32>
    %c0_16 = arith.constant 0 : index
    %c0_17 = arith.constant 0 : index
    %c0_18 = arith.constant 0 : index
    %21 = vector.load %arg8[%c0_16, %c0_17, %c0_18] : memref<1x64x256xf32, #tpu.memory_space<vmem>>, vector<1x64x256xf32>
    tpu.vector_store %arg8[%c0_16, %c0_17, %c0_18], %20 {strides = array<i32>} : memref<1x64x256xf32, #tpu.memory_space<vmem>>, vector<1x64x256xf32>,
    return
  }
  func.func @transform_0(%arg0: i32, %arg1: i32) -> (i32, i32, i32) {
    %c0_i32 = arith.constant 0 : i32
    %c0_i32_0 = arith.constant 0 : i32
    %c0_i32_1 = arith.constant 0 : i32
    return %arg0, %c0_i32, %c0_i32_0 : i32, i32, i32
  }
  func.func @transform_1(%arg0: i32, %arg1: i32) -> (i32, i32) {
    %c0_i32 = arith.constant 0 : i32
    %c0_i32_0 = arith.constant 0 : i32
    %c0_i32_1 = arith.constant 0 : i32
    return %c0_i32, %c0_i32_0 : i32, i32
  }
  func.func @transform_2(%arg0: i32, %arg1: i32) -> (i32, i32) {
    %c0_i32 = arith.constant 0 : i32
    %c0_i32_0 = arith.constant 0 : i32
    %c0_i32_1 = arith.constant 0 : i32
    return %c0_i32, %c0_i32_0 : i32, i32
  }
  func.func @transform_3(%arg0: i32, %arg1: i32) -> (i32, i32) {
    %c0_i32 = arith.constant 0 : i32
    %c0_i32_0 = arith.constant 0 : i32
    %c0_i32_1 = arith.constant 0 : i32
    return %c0_i32, %c0_i32_0 : i32, i32
  }
  func.func @transform_4(%arg0: i32, %arg1: i32) -> (i32, i32) {
    %c0_i32 = arith.constant 0 : i32
    %c0_i32_0 = arith.constant 0 : i32
    %c0_i32_1 = arith.constant 0 : i32
    return %c0_i32, %c0_i32_0 : i32, i32
  }
  func.func @transform_5(%arg0: i32, %arg1: i32) -> (i32, i32, i32) {
    %c0_i32 = arith.constant 0 : i32
    %c0_i32_0 = arith.constant 0 : i32
    return %arg0, %c0_i32, %arg1 : i32, i32, i32
  }
  func.func @transform_6(%arg0: i32, %arg1: i32) -> (i32, i32, i32) {
    %c0_i32 = arith.constant 0 : i32
    %c0_i32_0 = arith.constant 0 : i32
    return %arg0, %c0_i32, %arg1 : i32, i32, i32
  }
}

</mosaic_0001>

<bundles_post_ra>
// kernel: tpu_custom_call.1
= control target key start
LH: loop header
LB: loop body
LE: loop exit
PB: predicated region body
PF: predicated region fallthrough
CT: control target
= control target key end

     0   :  { %11 = vsyncpa [#allocation3], 0  ;;  %s1303_s0 = inlined_call_operand.vmem [shape: f32[2,64,1], index: 0, kind: input, shape index: {}]   ;;  %s1304_s1 = inlined_call_operand.vmem [shape: f32[4,64], index: 1, kind: input, shape index: {}]   ;;  %s1305_s2 = inlined_call_operand.vmem [shape: f32[4,1], index: 2, kind: input, shape index: {}]   ;;  %s1306_s3 = inlined_call_operand.vmem [shape: f32[64,4], index: 3, kind: input, shape index: {}]   ;;  %s1307_s4 = inlined_call_operand.vmem [shape: f32[64,1], index: 4, kind: input, shape index: {}]   ;;  %s1308_s5 = inlined_call_operand.vmem [shape: f32[2,64,256], index: 5, kind: input, shape index: {}]   ;;  %s1309_s6 = inlined_call_operand.hbm [shape: f32[2,64,256], index: 6, kind: output, shape index: {}]  }
   0x1   :  { %13 = vsyncpa [#allocation3 + $0x1], 0  ;;  %s1079_s21 = smov 0   ;;  %s1081_s22 = smov 0  }
   0x2   :  { %s1083_s23 = smov 0   ;;  %s1085_s24 = smov 0  }
   0x3   :  { %s1087_s25 = smov 0   ;;  %s1089_s26 = smov 0  }
   0x4 LB: > { %s779_s27 = sadd.s32 4294967295, %s1036_s26   ;;  %s780_s28 = sadd.s32 4294967294, %s1036_s26   ;;  %s1036_s26 = sphi %s1089_s26, %s19_s26   ;;  %s1032_s25 = sphi %s1087_s25, %s1316_s25   ;;  %s1028_s24 = sphi %s1085_s24, %s1315_s24   ;;  %s1024_s23 = sphi %s1083_s23, %s1314_s23   ;;  %s1020_s22 = sphi %s1081_s22, %s1313_s22   ;;  %s1016_s21 = sphi %s1079_s21, %s1312_s21  }
   0x5   : > { %s31_s29 = sadd.s32 1, %s1032_s25  ;;  %s178_s30 = sadd.s32 1, %s1024_s23 }
   0x6   : > { %p33_p0 = scmp.ge.s32.totalorder %s31_s29, 2  ;;  %p188_p1 = scmp.ne.s32.totalorder %s1024_s23, %s1020_s22 }
   0x7   : > { %p189_p2 = scmp.eq.s32.totalorder %s779_s27, 1  ;;  %p194_p3 = scmp.ne.s32.totalorder %s1020_s22, %s1016_s21 }
   0x8   : > { %s1318_s29 = smov (%p33_p0, %s31_s29), 0  ;;  %p195_p5 = scmp.eq.s32.totalorder %s780_s28, 1 }
   0x9   : > { %p1119_p4 = por %p189_p2, %p188_p1  ;;  %s173_s8 = ssub.s32 %s1032_s25, %s1318_s29 }
   0xa   : > { %p783_p6 = scmp.ge.s32.totalorder %s1036_s26, 1  ;;  %p176_p7 = scmp.eq.s32.totalorder %s173_s8, 0 }
   0xb   : > { %p1126_p8 = por %p195_p5, %p194_p3  ;;  %p246_p9 = scmp.lt.s32.totalorder %s1036_s26, 3 }
   0xc   : > { %s1132_s10 = scalar_select %p176_p7, %s1024_s23, %s178_s30  }
   0xd   : > { %p247_p10 = pnand %p783_p6, %p246_p9 }
   0xe   : > { %p285_p11 = scmp.lt.s32.totalorder (!%p247_p10), %s1028_s24, 1  ;;  %s282_s14 = sand.u32 (!%p247_p10), 1, %s1020_s22  }
   0xf   : > { %250 = sbr.rel (%p247_p10) target bundleno = 622 (0x26e), region = 44  ;;  %s784_s18 = sshll.u32 (!%p247_p10), %s282_s14, 7 }
  0x10   : > { %s814_s19 = sshll.u32 (!%p247_p10), %s1028_s24, 11 }
  0x11   : > { %s1248_s30 = scalar_lea.hbm (!%p247_p10), %s1309_s6, %s814_s19 }
  0x14   : > { %v1038_v0 = vmov 0.0   ;;  %vm1039_vm0 = vmmov 0   ;;  %s1136_s11 = scalar_select %p285_p11, %s1028_s24, 1  ;;  %v309_v9 = vld [vmem:[%s1304_s1] sm:$0xf]  ;;  %vm311_vm1 = vcmask 523264  }
  0x15   : > { %833 = vmatprep.subr.mxu0 %v1038_v0  ;;  %849 = vmatprep.mubr.msk.f32.mxu0 %vm1039_vm0, %v1038_v0  ;;  %v386_v10 = vld [vmem:[%s1306_s3] sm:$0xff]  ;;  %vm402_vm2 = vcmask 31744   ;;  %vm427_vm3 = vcmask 1043456   ;;  %v387_v16 = vld [vmem:[%s1306_s3 + $0x8] sm:$0xff]  ;;  %v388_v17 = vld [vmem:[%s1306_s3 + $0x10] sm:$0xff]  ;;  %v1040_v23 = vmov 0  }
  0x16   : > { %s812_s12 = sshll.u32 %s1136_s11, 6  ;;  %854 = vmatprep.mubr.msk.f32.mxu1 %vm402_vm2, %v386_v10  ;;  %v310_v11 = vld [vmem:[%s1305_s2] sm:$0xf]  ;;  %v389_v18 = vld [vmem:[%s1306_s3 + $0x18] sm:$0xff]  ;;  %v391_v20 = vld [vmem:[%s1306_s3 + $0x28] sm:$0xff]  ;;  %926 = vset.pattern.permute.xlu0 %v1040_v23  ;;  %s813_s13 = sshll.u32 %s1136_s11, 7 }
  0x17   : > { %s289_s15 = scalar_lea.vmem %s1303_s0, %s812_s12  ;;  %v390_v19 = vld [vmem:[%s1306_s3 + $0x20] sm:$0xff]  ;;  %v392_v21 = vld [vmem:[%s1306_s3 + $0x30] sm:$0xff]  ;;  %v393_v22 = vld [vmem:[%s1306_s3 + $0x38] sm:$0xff]  ;;  %927 = vset.pattern.permute.xlu1 %v1040_v23  ;;  %s1209_s17 = scalar_lea.vmem %s1308_s5, %s813_s13 }
  0x18   : > { %v308_v1 = vld [vmem:[%s289_s15 + $0x38] sm:$0xff]  ;;  %v307_v2 = vld [vmem:[%s289_s15 + $0x30] sm:$0xff]  ;;  %v306_v3 = vld [vmem:[%s289_s15 + $0x28] sm:$0xff]  ;;  %s1219_s11 = scalar_lea.vmem [#allocation2], %s784_s18  ;;  %s1258_s24 = scalar_lea.sflag [#allocation3], %s282_s14 }
  0x19   : > { %834 = vmatpush3.msra.mxu0 %v308_v1  ;;  %v305_v4 = vld [vmem:[%s289_s15 + $0x20] sm:$0xff]  ;;  %v304_v5 = vld [vmem:[%s289_s15 + $0x18] sm:$0xff]  ;;  %v303_v6 = vld [vmem:[%s289_s15 + $0x10] sm:$0xff]  ;;  %s688_s20 = sshll.u32 %s1219_s11, 4  ;;  %s1041_s12 = smov [#allocation2]   ;;  %s1250_s20 = int_to_ptr.vmem [resolvable:$true] %s688_s20 }
  0x1a   : > { %835 = vmatprep.subr.mxu0 %v1038_v0  ;;  %v302_v7 = vld [vmem:[%s289_s15 + $0x8] sm:$0xff]  ;;  %v301_v8 = vld [vmem:[%s289_s15] sm:$0xff]  ;;  %v397_v29 = vld [vmem:[%s1307_s4 + $0x18] sm:$0xff]  ;;  %s960_s8 = scalar_lea.vmem %s1250_s20, 2048  ;;  %s964_s13 = sshll.u32 %s1041_s12, 4  ;;  %s965_s13 = int_to_ptr.vmem [resolvable:$false] %s964_s13 }
  0x1b   : > { %836 = vmatpush3.msra.mxu0 %v307_v2  ;;  %v395_v24 = vld [vmem:[%s1307_s4 + $0x8] sm:$0xff]  ;;  %v394_v26 = vld [vmem:[%s1307_s4] sm:$0xff]  ;;  %v396_v33 = vld [vmem:[%s1307_s4 + $0x10] sm:$0xff]  ;;  %p961_p12 = scmp.ne.s32.totalorder %s1250_s20, %s960_s8  ;;  %s966_s15 = scalar_lea.vmem %s965_s13, 4096 }
  0x1c   : > { %837 = vmatprep.subr.mxu0 %v1038_v0  ;;  %v399_v37 = vld [vmem:[%s1307_s4 + $0x28] sm:$0xff]  ;;  %v398_v41 = vld [vmem:[%s1307_s4 + $0x20] sm:$0xff]  ;;  %v401_v45 = vld [vmem:[%s1307_s4 + $0x38] sm:$0xff]  ;;  %p967_p1 = scmp.lt.s32.totalorder %s1250_s20, %s965_s13  ;;  %p968_p2 = scmp.lt.s32.totalorder %s966_s15, %s960_s8 }
  0x1d   : > { %838 = vmatpush3.msra.mxu0 %v306_v3  ;;  %v400_v49 = vld [vmem:[%s1307_s4 + $0x30] sm:$0xff]  ;;  %v584_v23 = vld [vmem:[%s1209_s17] sm:$0xff]  ;;  %p962_p13 = pnand %p961_p12, %p1119_p4 }
  0x1e   : > { %839 = vmatprep.subr.mxu0 %v1038_v0  ;;  %p969_p3 = por %p968_p2, %p967_p1 }
  0x1f   : > { %840 = vmatpush3.msra.mxu0 %v305_v4  ;;  %p963_p0 = pneg %p962_p13 }
  0x20   : > { %841 = vmatprep.subr.mxu0 %v1038_v0 }
  0x21   : > { %842 = vmatpush3.msra.mxu0 %v304_v5  ;;  %p970_p5 = pnand %p969_p3, %p963_p0 }
  0x22   : > { %843 = vmatprep.subr.mxu0 %v1038_v0 }
  0x23   : > { %844 = vmatpush3.msra.mxu0 %v303_v6 }
  0x24   : > { %845 = vmatprep.subr.mxu0 %v1038_v0 }
  0x25   : > { %846 = vmatpush3.msra.mxu0 %v302_v7 }
  0x26   : > { %847 = vmatprep.subr.mxu0 %v1038_v0 }
  0x27   : > { %848 = vmatpush3.msra.mxu0 %v301_v8 }
  0x28   : > { %850 = vmatmul.mubr.msk.f32.vlgmr.msra.gmra.mxu0 %vm311_vm1, %v309_v9 }
  0xe8   : > { %v381_v12 = vpop.f32.mrf.mxu0 }
  0xe9   : > { %v382_v13 = vadd.f32 %v381_v12, %v310_v11 }
  0xea   : > { %v851_v14 = vpop.f32.mrf.mxu0 }
  0xeb   : > { %v385_v15 = vmax.f32 %v382_v13, 0.0 }
  0xed   : > { %852 = vmatprep.subr.msk.mxu1 %vm427_vm3, %v385_v15 }
  0xee   : > { %853 = vmatpush3.msk.msra.mxu1 %vm427_vm3, %v385_v15 }
  0xef   : > { %855 = vmatmul.mubr.msk.f32.vlgmr.msra.gmra.mxu1 %vm402_vm2, %v387_v16  ;;  %v586_v16 = vld [vmem:[%s1209_s17 + $0x10] sm:$0xff] }
  0xf0   : > { %857 = vmatprep.mubr.msk.f32.mxu1 %vm402_vm2, %v388_v17  ;;  %v587_v17 = vld [vmem:[%s1209_s17 + $0x18] sm:$0xff] }
  0xf3   : > { %858 = vmatmul.mubr.msk.f32.gmra.mxu1 %vm402_vm2, %v389_v18 }
  0xf4   : > { %860 = vmatprep.mubr.msk.f32.mxu1 %vm402_vm2, %v390_v19 }
  0xf7   : > { %861 = vmatmul.mubr.msk.f32.gmra.mxu1 %vm402_vm2, %v391_v20 }
  0xf8   : > { %863 = vmatprep.mubr.msk.f32.mxu1 %vm402_vm2, %v392_v21  ;;  %v590_v21 = vld [vmem:[%s1209_s17 + $0x30] sm:$0xff] }
  0xfb   : > { %864 = vmatmul.mubr.msk.f32.gmra.mxu1 %vm402_vm2, %v393_v22  ;;  %v591_v22 = vld [vmem:[%s1209_s17 + $0x38] sm:$0xff] }
 0x1af   : > { %v856_v25 = vpop.f32.mrf.mxu1 }
 0x1b0   : > { %v503_v27 = vadd.f32 %v856_v25, %v395_v24  ;;  %v585_v24 = vld [vmem:[%s1209_s17 + $0x8] sm:$0xff] }
 0x1b1   : > { %v497_v28 = vpop.f32.mrf.mxu1 }
 0x1b2   : > { %v800_v30 = vmul.f32 -1.442695, %v503_v27  ;;  %v498_v31 = vadd.f32 %v497_v28, %v394_v26 }
 0x1b3   : > { %v859_v32 = vpop.f32.mrf.mxu1 }
 0x1b4   : > { %928 = vpow2.f32 %v800_v30  ;;  %v799_v34 = vmul.f32 -1.442695, %v498_v31  ;;  %v513_v35 = vadd.f32 %v859_v32, %v397_v29  ;;  %v588_v31 = vld [vmem:[%s1209_s17 + $0x20] sm:$0xff]  ;;  %v589_v32 = vld [vmem:[%s1209_s17 + $0x28] sm:$0xff] }
 0x1b5   : > { %v507_v36 = vpop.f32.mrf.mxu1 }
 0x1b6   : > { %930 = vpow2.f32 %v799_v34  ;;  %v802_v38 = vmul.f32 -1.442695, %v513_v35  ;;  %v508_v39 = vadd.f32 %v507_v36, %v396_v33  ;;  %v592_v34 = vld [vmem:[%s1209_s17 + $0x40] sm:$0xff]  ;;  %v593_v35 = vld [vmem:[%s1209_s17 + $0x48] sm:$0xff] }
 0x1b7   : > { %v862_v40 = vpop.f32.mrf.mxu1 }
 0x1b8   : > { %932 = vpow2.f32 %v802_v38  ;;  %v801_v42 = vmul.f32 -1.442695, %v508_v39  ;;  %v523_v43 = vadd.f32 %v862_v40, %v399_v37  ;;  %v594_v39 = vld [vmem:[%s1209_s17 + $0x50] sm:$0xff]  ;;  %v595_v40 = vld [vmem:[%s1209_s17 + $0x58] sm:$0xff] }
 0x1b9   : > { %v517_v44 = vpop.f32.mrf.mxu1 }
 0x1ba   : > { %934 = vpow2.f32 %v801_v42  ;;  %v804_v46 = vmul.f32 -1.442695, %v523_v43  ;;  %v518_v47 = vadd.f32 %v517_v44, %v398_v41  ;;  %v596_v44 = vld [vmem:[%s1209_s17 + $0x60] sm:$0xff] }
 0x1bb   : > { %v865_v48 = vpop.f32.mrf.mxu1 }
 0x1bc   : > { %936 = vpow2.f32 %v804_v46  ;;  %v803_v50 = vmul.f32 -1.442695, %v518_v47  ;;  %v533_v51 = vadd.f32 %v865_v48, %v401_v45  ;;  %v597_v45 = vld [vmem:[%s1209_s17 + $0x68] sm:$0xff] }
 0x1bd   : > { %v527_v52 = vpop.f32.mrf.mxu1 }
 0x1be   : > { %938 = vpow2.f32 %v803_v50  ;;  %v806_v53 = vmul.f32 -1.442695, %v533_v51  ;;  %v528_v54 = vadd.f32 %v527_v52, %v400_v49  ;;  %v598_v49 = vld [vmem:[%s1209_s17 + $0x70] sm:$0xff]  ;;  %v599_v50 = vld [vmem:[%s1209_s17 + $0x78] sm:$0xff] }
 0x1c0   : > { %940 = vpow2.f32 %v806_v53  ;;  %v805_v55 = vmul.f32 -1.442695, %v528_v54 }
 0x1c1   : > { %v929_v56 = vpop.eup %928 }
 0x1c2   : > { %v561_v57 = vadd.f32 1.0, %v929_v56  ;;  %942 = vpow2.f32 %v805_v55 }
 0x1c3   : > { %v931_v58 = vpop.eup %930 }
 0x1c4   : > { %944 = vrcp.f32 %v561_v57  ;;  %v560_v59 = vadd.f32 1.0, %v931_v58 }
 0x1c5   : > { %v933_v60 = vpop.eup %932 }
 0x1c6   : > { %v563_v61 = vadd.f32 1.0, %v933_v60  ;;  %946 = vrcp.f32 %v560_v59 }
 0x1c7   : > { %v935_v62 = vpop.eup %934 }
 0x1c8   : > { %948 = vrcp.f32 %v563_v61  ;;  %v562_v63 = vadd.f32 1.0, %v935_v62 }
 0x1c9   : > { %v937_v0 = vpop.eup %936 }
 0x1ca   : > { %950 = vrcp.f32 %v562_v63  ;;  %v565_v2 = vadd.f32 1.0, %v937_v0 }
 0x1cb   : > { %v939_v1 = vpop.eup %938 }
 0x1cc   : > { %v564_v3 = vadd.f32 1.0, %v939_v1 }
 0x1cd   : > { %v941_v4 = vpop.eup %940 }
 0x1ce   : > { %952 = vrcp.f32 %v564_v3  ;;  %v567_v6 = vadd.f32 1.0, %v941_v4 }
 0x1cf   : > { %v943_v5 = vpop.eup %942  ;;  %954 = vrcp.f32 %v565_v2 }
 0x1d0   : > { %v566_v7 = vadd.f32 1.0, %v943_v5 }
 0x1d1   : > { %v945_v8 = vpop.eup %944 }
 0x1d2   : > { %956 = vrcp.f32 %v566_v7  ;;  %607 = vperm.xlu0 %926, %v945_v8  }
 0x1d3   : > { %v947_v9 = vpop.eup %946  ;;  %958 = vrcp.f32 %v567_v6 }
 0x1d5   : > { %v949_v10 = vpop.eup %948 }
 0x1d6   : > { %617 = vperm.xlu1 %927, %v949_v10   ;;  %602 = vperm.xlu0 %926, %v947_v9  }
 0x1d7   : > { %v951_v11 = vpop.eup %950 }
 0x1da   : > { %612 = vperm.xlu1 %927, %v951_v11  }
 0x1db   : > { %v953_v12 = vpop.eup %952 }
 0x1dc   : > { %622 = vperm.xlu0 %926, %v953_v12   ;;  %v955_v13 = vpop.eup %954 }
 0x1de   : > { %627 = vperm.xlu1 %927, %v955_v13  }
 0x1df   : > { %v957_v14 = vpop.eup %956 }
 0x1e0   : > { %632 = vperm.xlu0 %926, %v957_v14   ;;  %v959_v15 = vpop.eup %958 }
 0x1e2   : > { %637 = vperm.xlu1 %927, %v959_v15  }
 0x24d   : > { %v608_v18 = vpop.permute.xlu0 %607 }
 0x24e   : > { %v642_v19 = vmul.f32 %v608_v18, %v586_v16  ;;  %v643_v20 = vmul.f32 %v608_v18, %v587_v17 }
 0x250   : > { %658 = vst [vmem:[%s1219_s11 + $0x10] sm:$0xff] %v642_v19  ;;  %659 = vst [vmem:[%s1219_s11 + $0x18] sm:$0xff] %v643_v20 }
 0x251   : > { %v618_v25 = vpop.permute.xlu1 %617  ;;  %v603_v26 = vpop.permute.xlu0 %602 }
 0x252   : > { %v646_v27 = vmul.f32 %v618_v25, %v590_v21  ;;  %v647_v28 = vmul.f32 %v618_v25, %v591_v22  ;;  %v640_v29 = vmul.f32 %v603_v26, %v584_v23  ;;  %v641_v30 = vmul.f32 %v603_v26, %v585_v24 }
 0x254   : > { %662 = vst [vmem:[%s1219_s11 + $0x30] sm:$0xff] %v646_v27  ;;  %663 = vst [vmem:[%s1219_s11 + $0x38] sm:$0xff] %v647_v28 }
 0x255   : > { %656 = vst [vmem:[%s1219_s11] sm:$0xff] %v640_v29  ;;  %657 = vst [vmem:[%s1219_s11 + $0x8] sm:$0xff] %v641_v30  ;;  %v613_v33 = vpop.permute.xlu1 %612 }
 0x256   : > { %v644_v36 = vmul.f32 %v613_v33, %v588_v31  ;;  %v645_v37 = vmul.f32 %v613_v33, %v589_v32 }
 0x257   : > { %v623_v38 = vpop.permute.xlu0 %622 }
 0x258   : > { %660 = vst [vmem:[%s1219_s11 + $0x20] sm:$0xff] %v644_v36  ;;  %661 = vst [vmem:[%s1219_s11 + $0x28] sm:$0xff] %v645_v37  ;;  %v648_v41 = vmul.f32 %v623_v38, %v592_v34  ;;  %v649_v42 = vmul.f32 %v623_v38, %v593_v35 }
 0x259   : > { %v628_v43 = vpop.permute.xlu1 %627 }
 0x25a   : > { %664 = vst [vmem:[%s1219_s11 + $0x40] sm:$0xff] %v648_v41  ;;  %665 = vst [vmem:[%s1219_s11 + $0x48] sm:$0xff] %v649_v42  ;;  %v650_v46 = vmul.f32 %v628_v43, %v594_v39  ;;  %v651_v47 = vmul.f32 %v628_v43, %v595_v40 }
 0x25b   : > { %v633_v48 = vpop.permute.xlu0 %632 }
 0x25c   : > { %666 = vst [vmem:[%s1219_s11 + $0x50] sm:$0xff] %v650_v46  ;;  %667 = vst [vmem:[%s1219_s11 + $0x58] sm:$0xff] %v651_v47  ;;  %v652_v51 = vmul.f32 %v633_v48, %v596_v44  ;;  %v653_v52 = vmul.f32 %v633_v48, %v597_v45 }
 0x25d   : > { %v638_v53 = vpop.permute.xlu1 %637 }
 0x25e   : > { %668 = vst [vmem:[%s1219_s11 + $0x60] sm:$0xff] %v652_v51  ;;  %669 = vst [vmem:[%s1219_s11 + $0x68] sm:$0xff] %v653_v52  ;;  %v654_v54 = vmul.f32 %v638_v53, %v598_v49  ;;  %v655_v55 = vmul.f32 %v638_v53, %v599_v50 }
 0x260   : > { %670 = vst [vmem:[%s1219_s11 + $0x70] sm:$0xff] %v654_v54  ;;  %671 = vst [vmem:[%s1219_s11 + $0x78] sm:$0xff] %v655_v55 }
 0x261   : > { %973 = shalt.err (!%p970_p5)
}
 0x262   : > { %s974_s14 = scalar_lea.hbm %s1248_s30, 2048  ;;  %s978_s18 = scalar_lea.hbm %s1309_s6, 4096 }
 0x263   : > { %p975_p6 = scmp.ne.s32.totalorder %s1248_s30, %s974_s14  ;;  %p979_p10 = scmp.lt.s32.totalorder %s1248_s30, %s1309_s6 }
 0x264   : > { %p980_p11 = scmp.lt.s32.totalorder %s978_s18, %s974_s14 }
 0x265   : > { %p976_p7 = pnand %p975_p6, %p1119_p4 }
 0x266   : > { %p981_p12 = por %p980_p11, %p979_p10 }
 0x267   : > { %p977_p9 = pneg %p976_p7 }
 0x269   : > { %p982_p13 = pnand %p981_p12, %p977_p9 }
 0x26b   : > { %985 = shalt.err (!%p982_p13)
}
 0x26c   : > { %s1042_s27 = smov 256   ;;  %s1043_s28 = smov 16  }
 0x26d   : > { %866 = dma.vmem_to_hbm [thread:$0]  (%p1119_p4), %s1250_s20, 2048, %s1248_s30, %s1258_s24, %s1042_s27, %s1042_s27, %s1043_s28  }
 0x26e PF: > { %p872_p0 = scmp.ge.s32.totalorder %s1036_s26, 2  ;;  %s703_s8 = sand.u32 1, %s1016_s21  }
 0x26f   : > { %s704_s12 = scalar_lea.sflag [#allocation3], %s703_s8 }
 0x270   : > { %p869_p1 = pnand %p872_p0, %p1126_p8 }
 0x272   : > { %p870_p2 = pneg %p869_p1 }
 0x274   : > { %1011 = dma.done.wait (%p870_p2), %s704_s12, 2048  }
 0x275   : > { %1013 = vsyncadd (%p870_p2), %s704_s12, 4294965248  ;;  %s19_s26 = sadd.s32 1, %s1036_s26   ;;  %s1312_s21 = smov %s1020_s22 }
 0x276   : > { %p16_p3 = scmp.ge.s32.totalorder %s19_s26, 4   ;;  %s1313_s22 = smov %s1024_s23 }
 0x277   : > { %s1314_s23 = smov %s1132_s10  ;;  %s1315_s24 = smov %s1032_s25 }
 0x278   : > { %s1316_s25 = smov %s1318_s29  ;;  %18 = sbr.rel (!%p16_p3) target bundleno = 4 (0x4), region = 82 }
 0x27d   :  { %709 = vsyncpa [#allocation3], 1 }
 0x27e   :  { %711 = vsyncpa [#allocation3 + $0x1], 1 }

</bundles_post_ra>
